<compile_context>
chip_gen: v5e
topology: v5e:2x2
jax: 0.10.0
libtpu: 0.0.40
codegen_flags: <defaults>
</compile_context>

<pallas_src>
import jax
import jax.numpy as jnp
from jax.experimental import pallas as pl
from jax.experimental.pallas import tpu as pltpu

HIDDEN = 256
NEG_SLOPE = 0.2
_MAX_BLOCK_M = 4096
_ACT_VMEM_BUDGET = 24 * 1024 * 1024   # double-buffered per-tile activations


# ---------------------------------------------------------------------------
# Pallas kernel: one batch tile of the full 4-layer MLP (weights resident).
# ---------------------------------------------------------------------------
def _disc_mlp_kernel(x_ref, lab_ref,
                     w1x_ref, w1l_ref, b1_ref,
                     w2_ref, b2_ref,
                     w3_ref, b3_ref,
                     w4_ref, b4_ref,
                     out_ref):
    def lrelu(h):
        # 2 VALU ops/elem (max) instead of compare+select.
        return jnp.maximum(h, NEG_SLOPE * h)

    # --- Layer 1: Linear(D_img + 2*label_dim, 256) + LeakyReLU(0.2) --------
    # Split matmul over the (img, labels) operands: the concatenated d_in is
    # never written to / read back from HBM.
    h = jnp.dot(x_ref[...], w1x_ref[...], preferred_element_type=jnp.float32)
    h = h + jnp.dot(lab_ref[...], w1l_ref[...],
                    preferred_element_type=jnp.float32)
    h = lrelu(h + b1_ref[...])

    # --- Layer 2: Linear(256,256) + Dropout(0.4)[eval: id] + LeakyReLU -----
    h = jnp.dot(h.astype(jnp.bfloat16), w2_ref[...],
                preferred_element_type=jnp.float32)
    h = lrelu(h + b2_ref[...])

    # --- Layer 3: Linear(256,256) + Dropout(0.4)[eval: id] + LeakyReLU -----
    h = jnp.dot(h.astype(jnp.bfloat16), w3_ref[...],
                preferred_element_type=jnp.float32)
    h = lrelu(h + b3_ref[...])

    # --- Layer 4: Linear(256, 1) + Sigmoid ----------------------------------
    # N=1 column -> VPU multiply + lane reduce (XLU) instead of an MXU pass.
    # Then relayout [block_m, 1] -> [1, block_m] so the store is lane-dense.
    z = jnp.sum(h * w4_ref[...], axis=-1, keepdims=True) + b4_ref[0]
    out_ref[...] = jax.nn.sigmoid(z).reshape(out_ref.shape)


def _round_up(x, m):
    return ((x + m - 1) // m) * m


def _pick_block_m(B, d_img, d_lab):
    if B < 512:
        # Single tile; 16 rows align with bf16 sublane packing.
        return _round_up(max(B, 16), 16)
    # Large B: big tiles amortize the ~0.35 us/step grid overhead, but keep
    # >= 2 grid steps so the "parallel" axis shards across v7x's 2 TCs.
    block_m = min(_MAX_BLOCK_M, _round_up((B + 1) // 2, 256))
    # Cap so double-buffered activations stay inside the VMEM budget.
    bytes_per_row = (d_img + d_lab) * 2 + 4
    max_rows = max(256, (_ACT_VMEM_BUDGET // (2 * bytes_per_row)) // 256 * 256)
    return min(block_m, max_rows)


# ---------------------------------------------------------------------------
# Pallas wrapper: batch-tiled grid, resident weights, parallel batch axis.
# ---------------------------------------------------------------------------
def discriminator_mlp(img_flat, lab, kparams, *, block_m=None):
    B, d_img = img_flat.shape
    d_lab = lab.shape[1]

    if block_m is None:
        block_m = _pick_block_m(B, d_img, d_lab)
    b_pad = _round_up(B, block_m)
    if b_pad != B:
        img_flat = jnp.pad(img_flat, ((0, b_pad - B), (0, 0)))
        lab = jnp.pad(lab, ((0, b_pad - B), (0, 0)))
    num_tiles = b_pad // block_m

    def batch_map(i):
        return (i, 0)

    def const_map(i):
        return (0, 0)

    # Weights/biases: constant index_map -> fetched once; single buffer.
    resident = dict(pipeline_mode=pl.Buffered(1))

    # VMEM sizing + advisory cost estimate.
    w_bytes = ((d_img + d_lab) * HIDDEN + 2 * HIDDEN * HIDDEN) * 2 \
        + (3 * HIDDEN + HIDDEN + 1) * 4
    act_bytes = 2 * block_m * ((d_img + d_lab) * 2 + 4)   # 2 buffers, in + out
    vmem_limit = int(min(max(act_bytes + 2 * w_bytes + (4 << 20), 16 << 20),
                         56 << 20))
    flops = 2 * b_pad * ((d_img + d_lab) * HIDDEN + 2 * HIDDEN * HIDDEN + HIDDEN)
    cost = pl.CostEstimate(
        flops=flops,
        transcendentals=b_pad,
        bytes_accessed=b_pad * ((d_img + d_lab) * 2 + 4) + w_bytes)

    out = pl.pallas_call(
        _disc_mlp_kernel,
        out_shape=jax.ShapeDtypeStruct((num_tiles, block_m), jnp.float32),
        grid=(num_tiles,),
        in_specs=[
            pl.BlockSpec((block_m, d_img), batch_map),               # x tile
            pl.BlockSpec((block_m, d_lab), batch_map),               # label-emb tile
            pl.BlockSpec((d_img, HIDDEN), const_map, **resident),    # w1 (img rows)
            pl.BlockSpec((d_lab, HIDDEN), const_map, **resident),    # w1 (label rows)
            pl.BlockSpec((1, HIDDEN), const_map, **resident),        # b1
            pl.BlockSpec((HIDDEN, HIDDEN), const_map, **resident),   # w2
            pl.BlockSpec((1, HIDDEN), const_map, **resident),        # b2
            pl.BlockSpec((HIDDEN, HIDDEN), const_map, **resident),   # w3
            pl.BlockSpec((1, HIDDEN), const_map, **resident),        # b3
            pl.BlockSpec((1, HIDDEN), const_map, **resident),        # w4 (row vector)
            pl.BlockSpec(memory_space=pltpu.MemorySpace.SMEM),       # b4 scalar
        ],
        out_specs=pl.BlockSpec((1, block_m), batch_map),             # lane-dense
        compiler_params=pltpu.CompilerParams(
            dimension_semantics=("parallel",),
            vmem_limit_bytes=vmem_limit),
        cost_estimate=cost,
    )(img_flat, lab,
      kparams["w1x"], kparams["w1l"], kparams["b1"],
      kparams["w2"], kparams["b2"],
      kparams["w3"], kparams["b3"],
      kparams["w4"], kparams["b4"])
    return out.reshape(b_pad, 1)[:B]


# ---------------------------------------------------------------------------
# Parameter init (deterministic, PyTorch-style defaults) + kernel-ready pack.
# ---------------------------------------------------------------------------
def init_params(key, n_classes, label_dim, in_dim, hidden=HIDDEN):
    ks = jax.random.split(key, 9)

    def linear(kw, kb, fan_in, fan_out):
        bound = 1.0 / jnp.sqrt(fan_in)
        w = jax.random.uniform(kw, (fan_in, fan_out), jnp.float32, -bound, bound)
        b = jax.random.uniform(kb, (1, fan_out), jnp.float32, -bound, bound)
        return w, b

    emb = jax.random.normal(ks[0], (n_classes, label_dim), jnp.float32)
    w1, b1 = linear(ks[1], ks[2], in_dim, hidden)
    w2, b2 = linear(ks[3], ks[4], hidden, hidden)
    w3, b3 = linear(ks[5], ks[6], hidden, hidden)
    w4, b4 = linear(ks[7], ks[8], hidden, 1)
    return {"emb": emb,
            "w1": w1, "b1": b1,
            "w2": w2, "b2": b2,
            "w3": w3, "b3": b3,
            "w4": w4, "b4": b4}


def prepare_params(params, label_dim):
    """Split w1 for the fused-concat matmul and cast MXU weights to bf16."""
    d_lab = 2 * label_dim
    w1 = params["w1"]
    d_img = w1.shape[0] - d_lab
    return {
        "w1x": w1[:d_img].astype(jnp.bfloat16),
        "w1l": w1[d_img:].astype(jnp.bfloat16),
        "b1": params["b1"].astype(jnp.float32),
        "w2": params["w2"].astype(jnp.bfloat16),
        "b2": params["b2"].astype(jnp.float32),
        "w3": params["w3"].astype(jnp.bfloat16),
        "b3": params["b3"].astype(jnp.float32),
        "w4": params["w4"].reshape(1, HIDDEN).astype(jnp.float32),  # VPU path
        "b4": params["b4"].reshape(1).astype(jnp.float32),          # SMEM scalar
    }


# ---------------------------------------------------------------------------
# Full forward: embedding lookup (tiny JAX glue) -> Pallas MLP kernel.
# ---------------------------------------------------------------------------
@jax.jit
def discriminator_forward(kparams, emb, img, label1, label2):
    B = img.shape[0]
    img_flat = img.reshape(B, -1).astype(jnp.bfloat16)             # [B, C*H*W]
    e1 = jnp.take(emb, label1, axis=0)                             # [B, label_dim]
    e2 = jnp.take(emb, label2, axis=0)                             # [B, label_dim]
    lab = jnp.concatenate([e1, e2], axis=-1).astype(jnp.bfloat16)  # [B, 2*ld]
    return discriminator_mlp(img_flat, lab, kparams)               # [B, 1]


# Pure-JAX f32 reference for sanity checking the kernel.
def discriminator_reference(params, img, label1, label2):
    B = img.shape[0]
    img_flat = img.reshape(B, -1).astype(jnp.float32)
    e1 = jnp.take(params["emb"], label1, axis=0)
    e2 = jnp.take(params["emb"], label2, axis=0)
    h = jnp.concatenate([img_flat, e1, e2], axis=-1)

    def lrelu(x):
        return jnp.where(x > 0, x, NEG_SLOPE * x)

    h = lrelu(h @ params["w1"] + params["b1"])
    h = lrelu(h @ params["w2"] + params["b2"])
    h = lrelu(h @ params["w3"] + params["b3"])
    return jax.nn.sigmoid(h @ params["w4"] + params["b4"])


if __name__ == "__main__":
    # Module-consistent small opt: channels=1, img_size=16, n_classes=10, label_dim=16
    B, C, H, W = 8, 1, 16, 16
    n_classes, label_dim = 10, 16
    in_dim = C * H * W + 2 * label_dim   # 256 + 32 = 288

    key = jax.random.PRNGKey(0)
    k_params, k_img, k_l1, k_l2 = jax.random.split(key, 4)

    params = init_params(k_params, n_classes, label_dim, in_dim)
    kparams = prepare_params(params, label_dim)

    img = jax.random.normal(k_img, (B, C, H, W), jnp.float32)
    label1 = jax.random.randint(k_l1, (B,), 0, n_classes, dtype=jnp.int32)
    label2 = jax.random.randint(k_l2, (B,), 0, n_classes, dtype=jnp.int32)

    out = discriminator_forward(kparams, params["emb"], img, label1, label2)
    out = jax.block_until_ready(out)

    ref = discriminator_reference(params, img, label1, label2)
    assert out.shape == (B, 1)
    # Looser tolerance: MXU inputs are bf16 (f32 accumulation).
    assert jnp.allclose(out, ref, atol=3e-2, rtol=3e-2), "mismatch vs reference"

    print("KERNEL_OK")
</pallas_src>

<mosaic_0001>
module attributes {stable_mosaic.version = 11 : i64} {
  func.func @_disc_mlp_kernel(%arg0: i32, %arg1: memref<16x256xbf16, #tpu.memory_space<vmem>>, %arg2: memref<16x32xbf16, #tpu.memory_space<vmem>>, %arg3: memref<256x256xbf16, #tpu.memory_space<vmem>>, %arg4: memref<32x256xbf16, #tpu.memory_space<vmem>>, %arg5: memref<1x256xf32, #tpu.memory_space<vmem>>, %arg6: memref<256x256xbf16, #tpu.memory_space<vmem>>, %arg7: memref<1x256xf32, #tpu.memory_space<vmem>>, %arg8: memref<256x256xbf16, #tpu.memory_space<vmem>>, %arg9: memref<1x256xf32, #tpu.memory_space<vmem>>, %arg10: memref<1x256xf32, #tpu.memory_space<vmem>>, %arg11: memref<1xf32, #tpu.memory_space<smem>>, %arg12: memref<1x16xf32, #tpu.memory_space<vmem>>) attributes {dimension_semantics = [#tpu.dimension_semantics<parallel>], iteration_bounds = array<i64: 1>, scalar_prefetch = 0 : i64, scratch_operands = 0 : i64, tpu.core_type = #tpu.core_type<tc>, window_params = [{transform_indices = @transform_0, window_bounds = array<i64: 16, 256>}, {transform_indices = @transform_1, window_bounds = array<i64: 16, 32>}, {pipeline_mode = #tpu.pipeline_mode<synchronous>, transform_indices = @transform_2, window_bounds = array<i64: 256, 256>}, {pipeline_mode = #tpu.pipeline_mode<synchronous>, transform_indices = @transform_3, window_bounds = array<i64: 32, 256>}, {pipeline_mode = #tpu.pipeline_mode<synchronous>, transform_indices = @transform_4, window_bounds = array<i64: 1, 256>}, {pipeline_mode = #tpu.pipeline_mode<synchronous>, transform_indices = @transform_5, window_bounds = array<i64: 256, 256>}, {pipeline_mode = #tpu.pipeline_mode<synchronous>, transform_indices = @transform_6, window_bounds = array<i64: 1, 256>}, {pipeline_mode = #tpu.pipeline_mode<synchronous>, transform_indices = @transform_7, window_bounds = array<i64: 256, 256>}, {pipeline_mode = #tpu.pipeline_mode<synchronous>, transform_indices = @transform_8, window_bounds = array<i64: 1, 256>}, {pipeline_mode = #tpu.pipeline_mode<synchronous>, transform_indices = @transform_9, window_bounds = array<i64: 1, 256>}, {transform_indices = @transform_10, window_bounds = array<i64: 1>}, {transform_indices = @transform_11, window_bounds = array<i64: 1, 16>}]} {
    %c0 = arith.constant 0 : index
    %c0_0 = arith.constant 0 : index
    %0 = vector.load %arg1[%c0, %c0_0] : memref<16x256xbf16, #tpu.memory_space<vmem>>, vector<16x256xbf16>
    %c0_1 = arith.constant 0 : index
    %c0_2 = arith.constant 0 : index
    %1 = vector.load %arg3[%c0_1, %c0_2] : memref<256x256xbf16, #tpu.memory_space<vmem>>, vector<256x256xbf16>
    %cst = arith.constant dense<0.000000e+00> : vector<16x256xf32>
    %2 = tpu.matmul %0, %1, %cst {dimension_numbers = #tpu.dot_dimension_numbers<[1], [0], [0], [1], [0, 0, 1, 1], [], []>} : vector<16x256xbf16>, vector<256x256xbf16>, vector<16x256xf32> -> vector<16x256xf32>
    %c0_3 = arith.constant 0 : index
    %c0_4 = arith.constant 0 : index
    %3 = vector.load %arg2[%c0_3, %c0_4] : memref<16x32xbf16, #tpu.memory_space<vmem>>, vector<16x32xbf16>
    %c0_5 = arith.constant 0 : index
    %c0_6 = arith.constant 0 : index
    %4 = vector.load %arg4[%c0_5, %c0_6] : memref<32x256xbf16, #tpu.memory_space<vmem>>, vector<32x256xbf16>
    %cst_7 = arith.constant dense<0.000000e+00> : vector<16x256xf32>
    %5 = tpu.matmul %3, %4, %cst_7 {dimension_numbers = #tpu.dot_dimension_numbers<[1], [0], [0], [1], [0, 0, 1, 1], [], []>} : vector<16x32xbf16>, vector<32x256xbf16>, vector<16x256xf32> -> vector<16x256xf32>
    %6 = arith.addf %2, %5 : vector<16x256xf32>
    %c0_8 = arith.constant 0 : index
    %c0_9 = arith.constant 0 : index
    %7 = vector.load %arg5[%c0_8, %c0_9] : memref<1x256xf32, #tpu.memory_space<vmem>>, vector<1x256xf32>
    %8 = vector.broadcast %7 : vector<1x256xf32> to vector<16x256xf32>
    %9 = arith.addf %6, %8 : vector<16x256xf32>
    %cst_10 = arith.constant 2.000000e-01 : f32
    %10 = vector.broadcast %cst_10 : f32 to vector<16x256xf32>
    %11 = arith.mulf %10, %9 : vector<16x256xf32>
    %12 = arith.maximumf %9, %11 : vector<16x256xf32>
    %13 = arith.truncf %12 : vector<16x256xf32> to vector<16x256xbf16>
    %c0_11 = arith.constant 0 : index
    %c0_12 = arith.constant 0 : index
    %14 = vector.load %arg6[%c0_11, %c0_12] : memref<256x256xbf16, #tpu.memory_space<vmem>>, vector<256x256xbf16>
    %cst_13 = arith.constant dense<0.000000e+00> : vector<16x256xf32>
    %15 = tpu.matmul %13, %14, %cst_13 {dimension_numbers = #tpu.dot_dimension_numbers<[1], [0], [0], [1], [0, 0, 1, 1], [], []>} : vector<16x256xbf16>, vector<256x256xbf16>, vector<16x256xf32> -> vector<16x256xf32>
    %c0_14 = arith.constant 0 : index
    %c0_15 = arith.constant 0 : index
    %16 = vector.load %arg7[%c0_14, %c0_15] : memref<1x256xf32, #tpu.memory_space<vmem>>, vector<1x256xf32>
    %17 = vector.broadcast %16 : vector<1x256xf32> to vector<16x256xf32>
    %18 = arith.addf %15, %17 : vector<16x256xf32>
    %cst_16 = arith.constant 2.000000e-01 : f32
    %19 = vector.broadcast %cst_16 : f32 to vector<16x256xf32>
    %20 = arith.mulf %19, %18 : vector<16x256xf32>
    %21 = arith.maximumf %18, %20 : vector<16x256xf32>
    %22 = arith.truncf %21 : vector<16x256xf32> to vector<16x256xbf16>
    %c0_17 = arith.constant 0 : index
    %c0_18 = arith.constant 0 : index
    %23 = vector.load %arg8[%c0_17, %c0_18] : memref<256x256xbf16, #tpu.memory_space<vmem>>, vector<256x256xbf16>
    %cst_19 = arith.constant dense<0.000000e+00> : vector<16x256xf32>
    %24 = tpu.matmul %22, %23, %cst_19 {dimension_numbers = #tpu.dot_dimension_numbers<[1], [0], [0], [1], [0, 0, 1, 1], [], []>} : vector<16x256xbf16>, vector<256x256xbf16>, vector<16x256xf32> -> vector<16x256xf32>
    %c0_20 = arith.constant 0 : index
    %c0_21 = arith.constant 0 : index
    %25 = vector.load %arg9[%c0_20, %c0_21] : memref<1x256xf32, #tpu.memory_space<vmem>>, vector<1x256xf32>
    %26 = vector.broadcast %25 : vector<1x256xf32> to vector<16x256xf32>
    %27 = arith.addf %24, %26 : vector<16x256xf32>
    %cst_22 = arith.constant 2.000000e-01 : f32
    %28 = vector.broadcast %cst_22 : f32 to vector<16x256xf32>
    %29 = arith.mulf %28, %27 : vector<16x256xf32>
    %30 = arith.maximumf %27, %29 : vector<16x256xf32>
    %c0_23 = arith.constant 0 : index
    %c0_24 = arith.constant 0 : index
    %31 = vector.load %arg10[%c0_23, %c0_24] : memref<1x256xf32, #tpu.memory_space<vmem>>, vector<1x256xf32>
    %32 = vector.broadcast %31 : vector<1x256xf32> to vector<16x256xf32>
    %33 = arith.mulf %30, %32 : vector<16x256xf32>
    %cst_25 = arith.constant dense<0.000000e+00> : vector<16xf32>
    %34 = vector.multi_reduction <add>, %33, %cst_25 [1] : vector<16x256xf32> to vector<16xf32>
    %35 = vector.shape_cast %34 : vector<16xf32> to vector<16x1xf32>
    %c0_26 = arith.constant 0 : index
    %36 = memref.load %arg11[%c0_26] : memref<1xf32, #tpu.memory_space<smem>>
    %37 = vector.broadcast %36 : f32 to vector<16x1xf32>
    %38 = arith.addf %35, %37 : vector<16x1xf32>
    %39 = arith.negf %38 : vector<16x1xf32>
    %40 = math.exp %39 : vector<16x1xf32>
    %cst_27 = arith.constant 1.000000e+00 : f32
    %41 = vector.broadcast %cst_27 : f32 to vector<16x1xf32>
    %42 = arith.addf %41, %40 : vector<16x1xf32>
    %43 = arith.divf %41, %42 : vector<16x1xf32>
    %44 = vector.shape_cast %43 : vector<16x1xf32> to vector<1x16xf32>
    %c0_28 = arith.constant 0 : index
    %c0_29 = arith.constant 0 : index
    %45 = vector.load %arg12[%c0_28, %c0_29] : memref<1x16xf32, #tpu.memory_space<vmem>>, vector<1x16xf32>
    tpu.vector_store %arg12[%c0_28, %c0_29], %44 {strides = array<i32>} : memref<1x16xf32, #tpu.memory_space<vmem>>, vector<1x16xf32>,
    return
  }
  func.func @transform_0(%arg0: i32) -> (i32, i32) {
    %c0_i32 = arith.constant 0 : i32
    %c0_i32_0 = arith.constant 0 : i32
    return %arg0, %c0_i32 : i32, i32
  }
  func.func @transform_1(%arg0: i32) -> (i32, i32) {
    %c0_i32 = arith.constant 0 : i32
    %c0_i32_0 = arith.constant 0 : i32
    return %arg0, %c0_i32 : i32, i32
  }
  func.func @transform_2(%arg0: i32) -> (i32, i32) {
    %c0_i32 = arith.constant 0 : i32
    %c0_i32_0 = arith.constant 0 : i32
    %c0_i32_1 = arith.constant 0 : i32
    return %c0_i32, %c0_i32_0 : i32, i32
  }
  func.func @transform_3(%arg0: i32) -> (i32, i32) {
    %c0_i32 = arith.constant 0 : i32
    %c0_i32_0 = arith.constant 0 : i32
    %c0_i32_1 = arith.constant 0 : i32
    return %c0_i32, %c0_i32_0 : i32, i32
  }
  func.func @transform_4(%arg0: i32) -> (i32, i32) {
    %c0_i32 = arith.constant 0 : i32
    %c0_i32_0 = arith.constant 0 : i32
    %c0_i32_1 = arith.constant 0 : i32
    return %c0_i32, %c0_i32_0 : i32, i32
  }
  func.func @transform_5(%arg0: i32) -> (i32, i32) {
    %c0_i32 = arith.constant 0 : i32
    %c0_i32_0 = arith.constant 0 : i32
    %c0_i32_1 = arith.constant 0 : i32
    return %c0_i32, %c0_i32_0 : i32, i32
  }
  func.func @transform_6(%arg0: i32) -> (i32, i32) {
    %c0_i32 = arith.constant 0 : i32
    %c0_i32_0 = arith.constant 0 : i32
    %c0_i32_1 = arith.constant 0 : i32
    return %c0_i32, %c0_i32_0 : i32, i32
  }
  func.func @transform_7(%arg0: i32) -> (i32, i32) {
    %c0_i32 = arith.constant 0 : i32
    %c0_i32_0 = arith.constant 0 : i32
    %c0_i32_1 = arith.constant 0 : i32
    return %c0_i32, %c0_i32_0 : i32, i32
  }
  func.func @transform_8(%arg0: i32) -> (i32, i32) {
    %c0_i32 = arith.constant 0 : i32
    %c0_i32_0 = arith.constant 0 : i32
    %c0_i32_1 = arith.constant 0 : i32
    return %c0_i32, %c0_i32_0 : i32, i32
  }
  func.func @transform_9(%arg0: i32) -> (i32, i32) {
    %c0_i32 = arith.constant 0 : i32
    %c0_i32_0 = arith.constant 0 : i32
    %c0_i32_1 = arith.constant 0 : i32
    return %c0_i32, %c0_i32_0 : i32, i32
  }
  func.func @transform_10(%arg0: i32) -> i32 {
    %c0_i32 = arith.constant 0 : i32
    %c0_i32_0 = arith.constant 0 : i32
    return %c0_i32 : i32
  }
  func.func @transform_11(%arg0: i32) -> (i32, i32) {
    %c0_i32 = arith.constant 0 : i32
    %c0_i32_0 = arith.constant 0 : i32
    return %arg0, %c0_i32 : i32, i32
  }
}

</mosaic_0001>

<bundles_post_ra>
// kernel: discriminator_forward.1
= control target key start
LH: loop header
LB: loop body
LE: loop exit
PB: predicated region body
PF: predicated region fallthrough
CT: control target
= control target key end

     0   :  { %17 = vsyncpa [#allocation4], 0  ;;  %s1927_s0 = inlined_call_operand.vmem [shape: bf16[16,256], index: 0, kind: input, shape index: {}]   ;;  %s1928_s1 = inlined_call_operand.vmem [shape: bf16[16,32], index: 1, kind: input, shape index: {}]   ;;  %s1929_s2 = inlined_call_operand.vmem [shape: bf16[256,256], index: 2, kind: input, shape index: {}]   ;;  %s1930_s3 = inlined_call_operand.vmem [shape: bf16[32,256], index: 3, kind: input, shape index: {}]   ;;  %s1931_s4 = inlined_call_operand.vmem [shape: f32[1,256], index: 4, kind: input, shape index: {}]   ;;  %s1932_s5 = inlined_call_operand.hbm [shape: bf16[256,256], index: 5, kind: input, shape index: {}]   ;;  %s1933_s6 = inlined_call_operand.vmem [shape: f32[1,256], index: 6, kind: input, shape index: {}]   ;;  %s1934_s7 = inlined_call_operand.hbm [shape: bf16[256,256], index: 7, kind: input, shape index: {}]   ;;  %s1935_s8 = inlined_call_operand.vmem [shape: f32[1,256], index: 8, kind: input, shape index: {}]   ;;  %s1936_s9 = inlined_call_operand.vmem [shape: f32[1,256], index: 9, kind: input, shape index: {}]   ;;  %s1937_s10 = inlined_call_operand.<no memory space> [shape: f32[1], index: 10, kind: input, shape index: {}]   ;;  %s1938_s11 = inlined_call_operand.vmem [shape: f32[1,16], index: 11, kind: output, shape index: {}]  }
   0x1   :  { %s33_s19 = sshll.u32 %s1932_s5, 4  ;;  %s34_s19 = int_to_ptr.hbm [resolvable:$true] %s33_s19 }
   0x2   :  { %18 = vsyncpa [#allocation6], 0  ;;  %s1600_s20 = smov [#allocation3]   ;;  %s48_s24 = sshll.u32 %s1934_s7, 4  ;;  %s49_s24 = int_to_ptr.hbm [resolvable:$true] %s48_s24 }
   0x3   :  { %s35_s21 = sshll.u32 %s1600_s20, 4  ;;  %s1601_s25 = smov 128   ;;  %s36_s21 = int_to_ptr.vmem [resolvable:$true] %s35_s21 }
   0x4   :  { %s1602_s26 = smov 8   ;;  %s1603_s27 = smov [#allocation5]  }
   0x5   :  { %41 = dma.hbm_to_vmem [thread:$0]  %s34_s19, 4096, %s36_s21, [#allocation4], %s1601_s25, %s1601_s25, %s1602_s26  }
   0x6   :  { %s50_s28 = sshll.u32 %s1603_s27, 4  ;;  %s51_s28 = int_to_ptr.vmem [resolvable:$true] %s50_s28 }
   0x7   :  { %56 = dma.hbm_to_vmem [thread:$0]  %s49_s24, 4096, %s51_s28, [#allocation6], %s1601_s25, %s1601_s25, %s1602_s26  }
   0x8   :  { %1596 = dma.done.wait [#allocation4], 4096  }
   0x9   :  { %1597 = vsyncadd [#allocation4], 4294963200 }
   0xa   :  { %1598 = dma.done.wait [#allocation6], 4096  }
   0xb   :  { %1599 = vsyncadd [#allocation6], 4294963200  ;;  %v1031_v0 = vld [vmem:[%s1930_s3 + $0x10] sm:$0xf]  ;;  %v1471_v1 = vld [vmem:[%s1930_s3 + $0x14] sm:$0xf0] }
   0xc   :  { %v1470_v2 = vld [vmem:[%s1930_s3 + $0x14] sm:$0xf]  ;;  %v1032_v3 = vor.u32 %v1471_v1, %v1031_v0  ;;  %v1033_v4 = vld [vmem:[%s1930_s3 + $0x18] sm:$0xf0]  ;;  %v1105_v5 = vld [vmem:[%s1929_s2 + $0x70] sm:$0xf] }
   0xd   :  { %v1450_v6 = vld [vmem:[%s1929_s2 + $0x74] sm:$0xf0]  ;;  %v1036_v7 = vor.u32 %v1470_v2, %v1033_v4  ;;  %v1169_v9 = vld [vmem:[%s1929_s2 + $0xf0] sm:$0xf]  ;;  %v1023_v11 = vld [vmem:[%s1930_s3] sm:$0xf] }
   0xe   :  { %v1106_v8 = vor.u32 %v1450_v6, %v1105_v5  ;;  %v1466_v10 = vld [vmem:[%s1929_s2 + $0xf4] sm:$0xf0]  ;;  %147 = vmatpush.bf16.msra.mxu0 %v1032_v3  ;;  %v1469_v13 = vld [vmem:[%s1930_s3 + $0x4] sm:$0xf0]  ;;  %v1468_v14 = vld [vmem:[%s1930_s3 + $0x4] sm:$0xf] }
   0xf   :  { %v1170_v12 = vor.u32 %v1466_v10, %v1169_v9  ;;  %v1025_v15 = vld [vmem:[%s1930_s3 + $0x8] sm:$0xf0]  ;;  %vm137_vm0 = vcmask 261120   ;;  %161 = vmatpush.bf16.msra.mxu1 %v1036_v7  ;;  %v1024_v16 = vor.u32 %v1469_v13, %v1023_v11  ;;  %v1097_v18 = vld [vmem:[%s1929_s2 + $0x60] sm:$0xf]  ;;  %vm1006_vm9 = vcmask 130112  }
  0x10   :  { %339 = vmatpush.bf16.msra.mxu2 %v1106_v8  ;;  %v1028_v17 = vor.u32 %v1468_v14, %v1025_v15  ;;  %v1448_v19 = vld [vmem:[%s1929_s2 + $0x64] sm:$0xf0]  ;;  %v1161_v20 = vld [vmem:[%s1929_s2 + $0xe0] sm:$0xf]  ;;  %v1449_v23 = vld [vmem:[%s1929_s2 + $0x74] sm:$0xf] }
  0x11   :  { %353 = vmatpush.bf16.msra.mxu3 %v1170_v12  ;;  %v1098_v21 = vor.u32 %v1448_v19, %v1097_v18  ;;  %v1464_v22 = vld [vmem:[%s1929_s2 + $0xe4] sm:$0xf0]  ;;  %v1107_v24 = vld [vmem:[%s1929_s2 + $0x78] sm:$0xf0]  ;;  %v1465_v27 = vld [vmem:[%s1929_s2 + $0xf4] sm:$0xf] }
  0x12   :  { %v1162_v25 = vor.u32 %v1464_v22, %v1161_v20  ;;  %v1110_v26 = vor.u32 %v1449_v23, %v1107_v24  ;;  %v1171_v28 = vld [vmem:[%s1929_s2 + $0xf8] sm:$0xf0]  ;;  %v1089_v29 = vld [vmem:[%s1929_s2 + $0x50] sm:$0xf]  ;;  %148 = vmatpush.bf16.msra.mxu0 %v1024_v16  ;;  %v1446_v31 = vld [vmem:[%s1929_s2 + $0x54] sm:$0xf0] }
  0x13   :  { %v1174_v30 = vor.u32 %v1465_v27, %v1171_v28  ;;  %v1153_v32 = vld [vmem:[%s1929_s2 + $0xd0] sm:$0xf]  ;;  %v1462_v33 = vld [vmem:[%s1929_s2 + $0xd4] sm:$0xf0]  ;;  %162 = vmatpush.bf16.msra.mxu1 %v1028_v17  ;;  %v1090_v34 = vor.u32 %v1446_v31, %v1089_v29  ;;  %v1447_v35 = vld [vmem:[%s1929_s2 + $0x64] sm:$0xf] }
  0x14   :  { %340 = vmatpush.bf16.msra.mxu2 %v1098_v21  ;;  %v1099_v36 = vld [vmem:[%s1929_s2 + $0x68] sm:$0xf0]  ;;  %v1463_v37 = vld [vmem:[%s1929_s2 + $0xe4] sm:$0xf]  ;;  %v1154_v38 = vor.u32 %v1462_v33, %v1153_v32  ;;  %v1081_v41 = vld [vmem:[%s1929_s2 + $0x40] sm:$0xf] }
  0x15   :  { %354 = vmatpush.bf16.msra.mxu3 %v1162_v25  ;;  %v1102_v39 = vor.u32 %v1447_v35, %v1099_v36  ;;  %v1163_v40 = vld [vmem:[%s1929_s2 + $0xe8] sm:$0xf0]  ;;  %v1444_v42 = vld [vmem:[%s1929_s2 + $0x44] sm:$0xf0]  ;;  %v1145_v44 = vld [vmem:[%s1929_s2 + $0xc0] sm:$0xf] }
  0x16   :  { %367 = vmatpush.bf16.msrb.mxu0 %v1110_v26  ;;  %v1166_v43 = vor.u32 %v1463_v37, %v1163_v40  ;;  %v1460_v45 = vld [vmem:[%s1929_s2 + $0xc4] sm:$0xf0]  ;;  %v1445_v46 = vld [vmem:[%s1929_s2 + $0x54] sm:$0xf]  ;;  %v1091_v47 = vld [vmem:[%s1929_s2 + $0x58] sm:$0xf0]  ;;  %v1082_v50 = vor.u32 %v1444_v42, %v1081_v41 }
  0x17   :  { %381 = vmatpush.bf16.msrb.mxu1 %v1174_v30  ;;  %v1461_v48 = vld [vmem:[%s1929_s2 + $0xd4] sm:$0xf]  ;;  %v1155_v49 = vld [vmem:[%s1929_s2 + $0xd8] sm:$0xf0]  ;;  %v1467_v51 = vld [vmem:[%s1928_s1] sm:$0xff]  ;;  %v1146_v52 = vor.u32 %v1460_v45, %v1145_v44  ;;  %v1094_v53 = vor.u32 %v1445_v46, %v1091_v47  ;;  %vm1009_vm10 = vcmask 122880  }
  0x18   :  { %341 = vmatpush.bf16.msra.mxu2 %v1090_v34  ;;  %v1073_v54 = vld [vmem:[%s1929_s2 + $0x30] sm:$0xf]  ;;  %v1442_v55 = vld [vmem:[%s1929_s2 + $0x34] sm:$0xf0]  ;;  %v1158_v57 = vor.u32 %v1461_v48, %v1155_v49  ;;  %1037 = vmatmul.msk.bf16.vlgmr.msra.gmra.mxu0 %vm137_vm0, %v1467_v51  ;;  %v1443_v59 = vld [vmem:[%s1929_s2 + $0x44] sm:$0xf] }
  0x19   :  { %355 = vmatpush.bf16.msra.mxu3 %v1154_v38  ;;  %v1137_v56 = vld [vmem:[%s1929_s2 + $0xb0] sm:$0xf]  ;;  %v1458_v58 = vld [vmem:[%s1929_s2 + $0xb4] sm:$0xf0]  ;;  %v1083_v60 = vld [vmem:[%s1929_s2 + $0x48] sm:$0xf0]  ;;  %1038 = vmatmul.msk.bf16.vlgmr.msra.gmra.mxu1 %vm137_vm0, %v1467_v51  ;;  %v1074_v63 = vor.u32 %v1442_v55, %v1073_v54 }
  0x1a   :  { %368 = vmatpush.bf16.msrb.mxu0 %v1102_v39  ;;  %v1459_v61 = vld [vmem:[%s1929_s2 + $0xc4] sm:$0xf]  ;;  %v1147_v62 = vld [vmem:[%s1929_s2 + $0xc8] sm:$0xf0]  ;;  %v1138_v0 = vor.u32 %v1458_v58, %v1137_v56  ;;  %v1086_v1 = vor.u32 %v1443_v59, %v1083_v60  ;;  %v1065_v2 = vld [vmem:[%s1929_s2 + $0x20] sm:$0xf] }
  0x1b   :  { %382 = vmatpush.bf16.msrb.mxu1 %v1166_v43  ;;  %v1440_v3 = vld [vmem:[%s1929_s2 + $0x24] sm:$0xf0]  ;;  %v1129_v4 = vld [vmem:[%s1929_s2 + $0xa0] sm:$0xf]  ;;  %v1150_v5 = vor.u32 %v1459_v61, %v1147_v62  ;;  %v1441_v7 = vld [vmem:[%s1929_s2 + $0x34] sm:$0xf] }
  0x1c   :  { %342 = vmatpush.bf16.msra.mxu2 %v1082_v50  ;;  %v1456_v6 = vld [vmem:[%s1929_s2 + $0xa4] sm:$0xf0]  ;;  %v1075_v8 = vld [vmem:[%s1929_s2 + $0x38] sm:$0xf0]  ;;  %v1457_v9 = vld [vmem:[%s1929_s2 + $0xb4] sm:$0xf]  ;;  %v1066_v11 = vor.u32 %v1440_v3, %v1065_v2 }
  0x1d   :  { %356 = vmatpush.bf16.msra.mxu3 %v1146_v52  ;;  %v1139_v10 = vld [vmem:[%s1929_s2 + $0xb8] sm:$0xf0]  ;;  %v1130_v12 = vor.u32 %v1456_v6, %v1129_v4  ;;  %v1078_v13 = vor.u32 %v1441_v7, %v1075_v8  ;;  %v1057_v14 = vld [vmem:[%s1929_s2 + $0x10] sm:$0xf]  ;;  %v1438_v15 = vld [vmem:[%s1929_s2 + $0x14] sm:$0xf0] }
  0x1e   :  { %369 = vmatpush.bf16.msrb.mxu0 %v1094_v53  ;;  %v1121_v16 = vld [vmem:[%s1929_s2 + $0x90] sm:$0xf]  ;;  %v1142_v17 = vor.u32 %v1457_v9, %v1139_v10  ;;  %v1454_v18 = vld [vmem:[%s1929_s2 + $0x94] sm:$0xf0]  ;;  %v1439_v19 = vld [vmem:[%s1929_s2 + $0x24] sm:$0xf]  ;;  %v1058_v23 = vor.u32 %v1438_v15, %v1057_v14 }
  0x1f   :  { %383 = vmatpush.bf16.msrb.mxu1 %v1158_v57  ;;  %v1067_v20 = vld [vmem:[%s1929_s2 + $0x28] sm:$0xf0]  ;;  %v1455_v21 = vld [vmem:[%s1929_s2 + $0xa4] sm:$0xf]  ;;  %v1122_v24 = vor.u32 %v1454_v18, %v1121_v16  ;;  %v1049_v26 = vld [vmem:[%s1929_s2] sm:$0xf] }
  0x20   :  { %343 = vmatpush.bf16.msra.mxu2 %v1074_v63  ;;  %v1131_v22 = vld [vmem:[%s1929_s2 + $0xa8] sm:$0xf0]  ;;  %v1070_v25 = vor.u32 %v1439_v19, %v1067_v20  ;;  %v1436_v27 = vld [vmem:[%s1929_s2 + $0x4] sm:$0xf0]  ;;  %v1113_v28 = vld [vmem:[%s1929_s2 + $0x80] sm:$0xf] }
  0x21   :  { %357 = vmatpush.bf16.msra.mxu3 %v1138_v0  ;;  %v1134_v29 = vor.u32 %v1455_v21, %v1131_v22  ;;  %v1452_v30 = vld [vmem:[%s1929_s2 + $0x84] sm:$0xf0]  ;;  %v1437_v31 = vld [vmem:[%s1929_s2 + $0x14] sm:$0xf]  ;;  %v1059_v32 = vld [vmem:[%s1929_s2 + $0x18] sm:$0xf0]  ;;  %v1050_v35 = vor.u32 %v1436_v27, %v1049_v26 }
  0x22   :  { %370 = vmatpush.bf16.msrb.mxu0 %v1086_v1  ;;  %v1453_v33 = vld [vmem:[%s1929_s2 + $0x94] sm:$0xf]  ;;  %v1123_v34 = vld [vmem:[%s1929_s2 + $0x98] sm:$0xf0]  ;;  %v1041_v36 = vld [vmem:[%s1927_s0] sm:$0xf]  ;;  %v1114_v38 = vor.u32 %v1452_v30, %v1113_v28  ;;  %v1062_v39 = vor.u32 %v1437_v31, %v1059_v32 }
  0x23   :  { %384 = vmatpush.bf16.msrb.mxu1 %v1150_v5  ;;  %v1434_v37 = vld [vmem:[%s1927_s0 + $0x4] sm:$0xf0]  ;;  %v1433_v40 = vld [vmem:[%s1927_s0 + $0x4] sm:$0xf]  ;;  %v1043_v41 = vld [vmem:[%s1927_s0 + $0x8] sm:$0xf0]  ;;  %v1126_v42 = vor.u32 %v1453_v33, %v1123_v34 }
  0x24   :  { %344 = vmatpush.bf16.msra.mxu2 %v1066_v11  ;;  %v1435_v43 = vld [vmem:[%s1929_s2 + $0x4] sm:$0xf]  ;;  %v1051_v44 = vld [vmem:[%s1929_s2 + $0x8] sm:$0xf0]  ;;  %v1042_v45 = vor.u32 %v1434_v37, %v1041_v36  ;;  %v1046_v48 = vor.u32 %v1433_v40, %v1043_v41  ;;  %v1297_v51 = vld [vmem:[#allocation3 + $0xf0] sm:$0xf] }
  0x25   :  { %358 = vmatpush.bf16.msra.mxu3 %v1130_v12  ;;  %v1451_v46 = vld [vmem:[%s1929_s2 + $0x84] sm:$0xf]  ;;  %v1115_v47 = vld [vmem:[%s1929_s2 + $0x88] sm:$0xf0]  ;;  %v1054_v49 = vor.u32 %v1435_v43, %v1051_v44  ;;  %v1503_v52 = vld [vmem:[#allocation3 + $0xf4] sm:$0xf0] }
  0x26   :  { %371 = vmatpush.bf16.msrb.mxu0 %v1078_v13  ;;  %v1118_v50 = vor.u32 %v1451_v46, %v1115_v47  ;;  %v1502_v53 = vld [vmem:[#allocation3 + $0xf4] sm:$0xf]  ;;  %v1298_v54 = vor.u32 %v1503_v52, %v1297_v51  ;;  %v1299_v55 = vld [vmem:[#allocation3 + $0xf8] sm:$0xf0]  ;;  %v1233_v56 = vld [vmem:[#allocation3 + $0x70] sm:$0xf] }
  0x27   :  { %385 = vmatpush.bf16.msrb.mxu1 %v1142_v17  ;;  %v1487_v57 = vld [vmem:[#allocation3 + $0x74] sm:$0xf0]  ;;  %v1302_v58 = vor.u32 %v1502_v53, %v1299_v55  ;;  %v1486_v60 = vld [vmem:[#allocation3 + $0x74] sm:$0xf]  ;;  %v1235_v61 = vld [vmem:[#allocation3 + $0x78] sm:$0xf0] }
  0x28   :  { %345 = vmatpush.bf16.msra.mxu2 %v1058_v23  ;;  %v1234_v59 = vor.u32 %v1487_v57, %v1233_v56  ;;  %v1289_v62 = vld [vmem:[#allocation3 + $0xe0] sm:$0xf]  ;;  %v1238_v63 = vor.u32 %v1486_v60, %v1235_v61  ;;  %v1501_v0 = vld [vmem:[#allocation3 + $0xe4] sm:$0xf0]  ;;  %v1500_v1 = vld [vmem:[#allocation3 + $0xe4] sm:$0xf] }
  0x29   :  { %359 = vmatpush.bf16.msra.mxu3 %v1122_v24  ;;  %v1291_v2 = vld [vmem:[#allocation3 + $0xe8] sm:$0xf0]  ;;  %v1290_v3 = vor.u32 %v1501_v0, %v1289_v62  ;;  %v1225_v5 = vld [vmem:[#allocation3 + $0x60] sm:$0xf]  ;;  %v1485_v6 = vld [vmem:[#allocation3 + $0x64] sm:$0xf0] }
  0x2a   :  { %372 = vmatpush.bf16.msrb.mxu0 %v1070_v25  ;;  %v1294_v4 = vor.u32 %v1500_v1, %v1291_v2  ;;  %v1484_v7 = vld [vmem:[#allocation3 + $0x64] sm:$0xf]  ;;  %v1226_v8 = vor.u32 %v1485_v6, %v1225_v5  ;;  %v1227_v9 = vld [vmem:[#allocation3 + $0x68] sm:$0xf0]  ;;  %v1281_v10 = vld [vmem:[#allocation3 + $0xd0] sm:$0xf] }
  0x2b   :  { %386 = vmatpush.bf16.msrb.mxu1 %v1134_v29  ;;  %v1499_v11 = vld [vmem:[#allocation3 + $0xd4] sm:$0xf0]  ;;  %v1230_v12 = vor.u32 %v1484_v7, %v1227_v9  ;;  %v1498_v13 = vld [vmem:[#allocation3 + $0xd4] sm:$0xf]  ;;  %v1283_v14 = vld [vmem:[#allocation3 + $0xd8] sm:$0xf0] }
  0x2c   :  { %346 = vmatpush.bf16.msra.mxu2 %v1050_v35  ;;  %v1217_v15 = vld [vmem:[#allocation3 + $0x50] sm:$0xf]  ;;  %v1282_v16 = vor.u32 %v1499_v11, %v1281_v10  ;;  %v1483_v17 = vld [vmem:[#allocation3 + $0x54] sm:$0xf0]  ;;  %v1482_v18 = vld [vmem:[#allocation3 + $0x54] sm:$0xf]  ;;  %v1286_v20 = vor.u32 %v1498_v13, %v1283_v14 }
  0x2d   :  { %360 = vmatpush.bf16.msra.mxu3 %v1114_v38  ;;  %v1219_v19 = vld [vmem:[#allocation3 + $0x58] sm:$0xf0]  ;;  %v1218_v21 = vor.u32 %v1483_v17, %v1217_v15  ;;  %v1273_v23 = vld [vmem:[#allocation3 + $0xc0] sm:$0xf]  ;;  %v1497_v24 = vld [vmem:[#allocation3 + $0xc4] sm:$0xf0] }
  0x2e   :  { %373 = vmatpush.bf16.msrb.mxu0 %v1062_v39  ;;  %v1222_v22 = vor.u32 %v1482_v18, %v1219_v19  ;;  %v1496_v25 = vld [vmem:[#allocation3 + $0xc4] sm:$0xf]  ;;  %v1274_v26 = vor.u32 %v1497_v24, %v1273_v23  ;;  %v1275_v27 = vld [vmem:[#allocation3 + $0xc8] sm:$0xf0]  ;;  %v1209_v28 = vld [vmem:[#allocation3 + $0x40] sm:$0xf] }
  0x2f   :  { %387 = vmatpush.bf16.msrb.mxu1 %v1126_v42  ;;  %347 = vmatmul.bf16.vlgmr.msra.gmra.mxu2 %v1042_v45  ;;  %v1481_v29 = vld [vmem:[#allocation3 + $0x44] sm:$0xf0]  ;;  %v1278_v30 = vor.u32 %v1496_v25, %v1275_v27  ;;  %v1480_v32 = vld [vmem:[#allocation3 + $0x44] sm:$0xf]  ;;  %v1211_v33 = vld [vmem:[#allocation3 + $0x48] sm:$0xf0] }
  0x30   :  { %361 = vmatmul.bf16.vlgmr.msra.gmra.mxu3 %v1046_v48  ;;  %613 = vmatpush.bf16.msrb.mxu2 %v1234_v59  ;;  %v1210_v31 = vor.u32 %v1481_v29, %v1209_v28  ;;  %v1214_v34 = vor.u32 %v1480_v32, %v1211_v33  ;;  %v1265_v35 = vld [vmem:[#allocation3 + $0xb0] sm:$0xf]  ;;  %v1495_v36 = vld [vmem:[#allocation3 + $0xb4] sm:$0xf0]  ;;  %v1494_v38 = vld [vmem:[#allocation3 + $0xb4] sm:$0xf] }
  0x31   :  { %627 = vmatpush.bf16.msrb.mxu3 %v1298_v54  ;;  %v1266_v37 = vor.u32 %v1495_v36, %v1265_v35  ;;  %v1267_v39 = vld [vmem:[#allocation3 + $0xb8] sm:$0xf0]  ;;  %v1201_v41 = vld [vmem:[#allocation3 + $0x30] sm:$0xf]  ;;  %v1479_v42 = vld [vmem:[#allocation3 + $0x34] sm:$0xf0] }
  0x32   :  { %374 = vmatpush.bf16.msrb.mxu0 %v1054_v49  ;;  %v1270_v40 = vor.u32 %v1494_v38, %v1267_v39  ;;  %v1478_v43 = vld [vmem:[#allocation3 + $0x34] sm:$0xf]  ;;  %v1202_v44 = vor.u32 %v1479_v42, %v1201_v41  ;;  %v1257_v47 = vld [vmem:[#allocation3 + $0xa0] sm:$0xf]  ;;  %v1492_v49 = vld [vmem:[#allocation3 + $0xa4] sm:$0xf] }
  0x33   :  { %388 = vmatpush.bf16.msrb.mxu1 %v1118_v50  ;;  %v1259_v51 = vld [vmem:[#allocation3 + $0xa8] sm:$0xf0]  ;;  %v1193_v52 = vld [vmem:[#allocation3 + $0x20] sm:$0xf]  ;;  %v1477_v53 = vld [vmem:[#allocation3 + $0x24] sm:$0xf0] }
  0x34   :  { %614 = vmatpush.bf16.msrb.mxu2 %v1226_v8  ;;  %v1262_v54 = vor.u32 %v1492_v49, %v1259_v51  ;;  %v1194_v55 = vor.u32 %v1477_v53, %v1193_v52  ;;  %v1476_v56 = vld [vmem:[#allocation3 + $0x24] sm:$0xf]  ;;  %v1195_v57 = vld [vmem:[#allocation3 + $0x28] sm:$0xf0]  ;;  %v1249_v59 = vld [vmem:[#allocation3 + $0x90] sm:$0xf] }
  0x35   :  { %375 = vmatmul.bf16.vlgmr.msrb.gmra.mxu0 %v1042_v45  ;;  %628 = vmatpush.bf16.msrb.mxu3 %v1290_v3  ;;  %v1203_v45 = vld [vmem:[#allocation3 + $0x38] sm:$0xf0]  ;;  %v1491_v60 = vld [vmem:[#allocation3 + $0x94] sm:$0xf0]  ;;  %v1490_v61 = vld [vmem:[#allocation3 + $0x94] sm:$0xf] }
  0x36   :  { %389 = vmatmul.bf16.vlgmr.msrb.gmra.mxu1 %v1046_v48  ;;  %641 = vmatpush.bf16.msra.mxu0 %v1238_v63  ;;  %v1206_v46 = vor.u32 %v1478_v43, %v1203_v45  ;;  %v1493_v48 = vld [vmem:[#allocation3 + $0xa4] sm:$0xf0]  ;;  %v1250_v62 = vor.u32 %v1491_v60, %v1249_v59  ;;  %v1251_v63 = vld [vmem:[#allocation3 + $0x98] sm:$0xf0]  ;;  %v1185_v0 = vld [vmem:[#allocation3 + $0x10] sm:$0xf] }
  0x37   :  { %655 = vmatpush.bf16.msra.mxu1 %v1302_v58  ;;  %v1258_v50 = vor.u32 %v1493_v48, %v1257_v47  ;;  %v1198_v58 = vor.u32 %v1476_v56, %v1195_v57  ;;  %v1475_v1 = vld [vmem:[#allocation3 + $0x14] sm:$0xf0]  ;;  %v1254_v3 = vor.u32 %v1490_v61, %v1251_v63  ;;  %v1474_v5 = vld [vmem:[#allocation3 + $0x14] sm:$0xf]  ;;  %v1187_v6 = vld [vmem:[#allocation3 + $0x18] sm:$0xf0] }
  0x38   :  { %615 = vmatpush.bf16.msrb.mxu2 %v1218_v21  ;;  %v1190_v8 = vor.u32 %v1474_v5, %v1187_v6  ;;  %v1241_v9 = vld [vmem:[#allocation3 + $0x80] sm:$0xf]  ;;  %v1489_v10 = vld [vmem:[#allocation3 + $0x84] sm:$0xf0]  ;;  %v1488_v11 = vld [vmem:[#allocation3 + $0x84] sm:$0xf] }
  0x39   :  { %629 = vmatpush.bf16.msrb.mxu3 %v1282_v16  ;;  %v1243_v13 = vld [vmem:[#allocation3 + $0x88] sm:$0xf0]  ;;  %v1177_v14 = vld [vmem:[#allocation3] sm:$0xf]  ;;  %v1473_v15 = vld [vmem:[#allocation3 + $0x4] sm:$0xf0] }
  0x3a   :  { %642 = vmatpush.bf16.msra.mxu0 %v1230_v12  ;;  %v1242_v12 = vor.u32 %v1489_v10, %v1241_v9  ;;  %v1246_v16 = vor.u32 %v1488_v11, %v1243_v13  ;;  %v1178_v17 = vor.u32 %v1473_v15, %v1177_v14  ;;  %v1472_v18 = vld [vmem:[#allocation3 + $0x4] sm:$0xf]  ;;  %v1179_v19 = vld [vmem:[#allocation3 + $0x8] sm:$0xf0]  ;;  %v1425_v21 = vld [vmem:[#allocation5 + $0xf0] sm:$0xf] }
  0x3b   :  { %656 = vmatpush.bf16.msra.mxu1 %v1294_v4  ;;  %v1186_v4 = vor.u32 %v1475_v1, %v1185_v0  ;;  %v1534_v23 = vld [vmem:[#allocation5 + $0xf4] sm:$0xf]  ;;  %v1427_v25 = vld [vmem:[#allocation5 + $0xf8] sm:$0xf0]  ;;  %v1533_v27 = vld [vmem:[#allocation5 + $0xe4] sm:$0xf0] }
  0x3c   :  { %616 = vmatpush.bf16.msrb.mxu2 %v1210_v31  ;;  %v1430_v29 = vor.u32 %v1534_v23, %v1427_v25  ;;  %v1419_v31 = vld [vmem:[#allocation5 + $0xe8] sm:$0xf0]  ;;  %v1361_v32 = vld [vmem:[#allocation5 + $0x70] sm:$0xf]  ;;  %v1519_v35 = vld [vmem:[#allocation5 + $0x74] sm:$0xf0] }
  0x3d   :  { %630 = vmatpush.bf16.msrb.mxu3 %v1274_v26  ;;  %v1417_v26 = vld [vmem:[#allocation5 + $0xe0] sm:$0xf]  ;;  %v1518_v36 = vld [vmem:[#allocation5 + $0x74] sm:$0xf]  ;;  %v1362_v39 = vor.u32 %v1519_v35, %v1361_v32  ;;  %v1409_v41 = vld [vmem:[#allocation5 + $0xd0] sm:$0xf] }
  0x3e   :  { %643 = vmatpush.bf16.msra.mxu0 %v1222_v22  ;;  %v1535_v22 = vld [vmem:[#allocation5 + $0xf4] sm:$0xf0]  ;;  %v1530_v43 = vld [vmem:[#allocation5 + $0xd4] sm:$0xf]  ;;  %v1353_v45 = vld [vmem:[#allocation5 + $0x60] sm:$0xf] }
  0x3f   :  { %657 = vmatpush.bf16.msra.mxu1 %v1286_v20  ;;  %v1182_v20 = vor.u32 %v1472_v18, %v1179_v19  ;;  %v1426_v24 = vor.u32 %v1535_v22, %v1425_v21  ;;  %v1531_v42 = vld [vmem:[#allocation5 + $0xd4] sm:$0xf0]  ;;  %v1516_v48 = vld [vmem:[#allocation5 + $0x64] sm:$0xf]  ;;  %v1355_v49 = vld [vmem:[#allocation5 + $0x68] sm:$0xf0] }
  0x40   :  { %617 = vmatpush.bf16.msrb.mxu2 %v1202_v44  ;;  %v1411_v44 = vld [vmem:[#allocation5 + $0xd8] sm:$0xf0]  ;;  %v1358_v51 = vor.u32 %v1516_v48, %v1355_v49  ;;  %v395_v57 = vld [vmem:[%s1931_s4] sm:$0x3]  ;;  %v1529_v23 = vld [vmem:[#allocation5 + $0xc4] sm:$0xf0] }
  0x41   :  { %631 = vmatpush.bf16.msrb.mxu3 %v1266_v37  ;;  %v1363_v37 = vld [vmem:[#allocation5 + $0x78] sm:$0xf0]  ;;  %v1414_v52 = vor.u32 %v1530_v43, %v1411_v44  ;;  %v398_v61 = vperm.slane %v395_v57, 1  ;;  %v397_v63 = vperm.slane %v395_v57, 0  ;;  %v1401_v22 = vld [vmem:[#allocation5 + $0xc0] sm:$0xf] }
  0x42   :  { %644 = vmatpush.bf16.msra.mxu0 %v1214_v34  ;;  %v1418_v34 = vor.u32 %v1533_v27, %v1417_v26  ;;  %v1402_v25 = vor.u32 %v1529_v23, %v1401_v22  ;;  %v1403_v26 = vld [vmem:[#allocation5 + $0xc8] sm:$0xf0]  ;;  %v1347_v32 = vld [vmem:[#allocation5 + $0x58] sm:$0xf0]  ;;  %v1527_v35 = vld [vmem:[#allocation5 + $0xb4] sm:$0xf0] }
  0x43   :  { %658 = vmatpush.bf16.msra.mxu1 %v1278_v30  ;;  %v1532_v30 = vld [vmem:[#allocation5 + $0xe4] sm:$0xf]  ;;  %v1339_v44 = vld [vmem:[#allocation5 + $0x48] sm:$0xf0] }
  0x44   :  { %618 = vmatpush.bf16.msrb.mxu2 %v1194_v55  ;;  %v1422_v38 = vor.u32 %v1532_v30, %v1419_v31  ;;  %v1514_v31 = vld [vmem:[#allocation5 + $0x54] sm:$0xf]  ;;  %v1524_v49 = vld [vmem:[#allocation5 + $0xa4] sm:$0xf]  ;;  %v1307_v22 = vld [vmem:[#allocation5 + $0x8] sm:$0xf0] }
  0x45   :  { %632 = vmatpush.bf16.msrb.mxu3 %v1258_v50  ;;  %v1410_v50 = vor.u32 %v1531_v42, %v1409_v41  ;;  %v1513_v41 = vld [vmem:[#allocation5 + $0x44] sm:$0xf0]  ;;  %v1512_v42 = vld [vmem:[#allocation5 + $0x44] sm:$0xf] }
  0x46   :  { %645 = vmatpush.bf16.msra.mxu0 %v1206_v46  ;;  %v1517_v46 = vld [vmem:[#allocation5 + $0x64] sm:$0xf0] }
  0x47   :  { %659 = vmatpush.bf16.msra.mxu1 %v1270_v40  ;;  %v1366_v40 = vor.u32 %v1518_v36, %v1363_v37  ;;  %v1354_v47 = vor.u32 %v1517_v46, %v1353_v45  ;;  %v1526_v36 = vld [vmem:[#allocation5 + $0xb4] sm:$0xf]  ;;  %v1342_v45 = vor.u32 %v1512_v42, %v1339_v44  ;;  %v1385_v46 = vld [vmem:[#allocation5 + $0xa0] sm:$0xf] }
  0x48   :  { %619 = vmatpush.bf16.msrb.mxu2 %v1186_v4 }
  0x49   :  { %633 = vmatpush.bf16.msrb.mxu3 %v1250_v62 }
  0x4a   :  { %646 = vmatpush.bf16.msra.mxu0 %v1198_v58 }
  0x4b   :  { %660 = vmatpush.bf16.msra.mxu1 %v1262_v54 }
  0x4c   :  { %620 = vmatpush.bf16.msrb.mxu2 %v1178_v17 }
  0x4d   :  { %634 = vmatpush.bf16.msrb.mxu3 %v1242_v12 }
  0x4e   :  { %647 = vmatpush.bf16.msra.mxu0 %v1190_v8 }
  0x4f   :  { %661 = vmatpush.bf16.msra.mxu1 %v1254_v3 }
  0x50   :  { %877 = vmatpush.bf16.msra.mxu2 %v1362_v39 }
  0x51   :  { %891 = vmatpush.bf16.msra.mxu3 %v1426_v24  ;;  %v1528_v24 = vld [vmem:[#allocation5 + $0xc4] sm:$0xf] }
  0x52   :  { %648 = vmatpush.bf16.msra.mxu0 %v1182_v20  ;;  %v1406_v27 = vor.u32 %v1528_v24, %v1403_v26  ;;  %v447_v24 = vld [vmem:[%s1933_s6] sm:$0x3] }
  0x53   :  { %662 = vmatpush.bf16.msra.mxu1 %v1246_v16 }
  0x54   :  { %878 = vmatpush.bf16.msra.mxu2 %v1354_v47  ;;  %v1525_v47 = vld [vmem:[#allocation5 + $0xa4] sm:$0xf0] }
  0x55   :  { %892 = vmatpush.bf16.msra.mxu3 %v1418_v34  ;;  %v1393_v34 = vld [vmem:[#allocation5 + $0xb0] sm:$0xf]  ;;  %v1386_v48 = vor.u32 %v1525_v47, %v1385_v46 }
  0x56   :  { %905 = vmatpush.bf16.msrb.mxu0 %v1366_v40  ;;  %v1394_v37 = vor.u32 %v1527_v35, %v1393_v34  ;;  %v1337_v40 = vld [vmem:[#allocation5 + $0x40] sm:$0xf] }
  0x57   :  { %919 = vmatpush.bf16.msrb.mxu1 %v1430_v29  ;;  %v1515_v29 = vld [vmem:[#allocation5 + $0x54] sm:$0xf0]  ;;  %v1338_v43 = vor.u32 %v1513_v41, %v1337_v40 }
  0x59   :  { %893 = vmatpush.bf16.msra.mxu3 %v1410_v50  ;;  %v1387_v50 = vld [vmem:[#allocation5 + $0xa8] sm:$0xf0] }
  0x5a   :  { %906 = vmatpush.bf16.msrb.mxu0 %v1358_v51  ;;  %v1390_v51 = vor.u32 %v1524_v49, %v1387_v50 }
  0x5b   :  { %920 = vmatpush.bf16.msrb.mxu1 %v1422_v38  ;;  %v1395_v38 = vld [vmem:[#allocation5 + $0xb8] sm:$0xf0] }
  0x5c   :  { %v1398_v39 = vor.u32 %v1526_v36, %v1395_v38 }
  0x5d   :  { %894 = vmatpush.bf16.msra.mxu3 %v1402_v25  ;;  %v450_v25 = vperm.slane %v447_v24, 1 }
  0x5f   :  { %921 = vmatpush.bf16.msrb.mxu1 %v1414_v52  ;;  %v1329_v52 = vld [vmem:[#allocation5 + $0x30] sm:$0xf] }
  0x61   :  { %895 = vmatpush.bf16.msra.mxu3 %v1394_v37 }
  0x63   :  { %922 = vmatpush.bf16.msrb.mxu1 %v1406_v27 }
  0x65   :  { %896 = vmatpush.bf16.msra.mxu3 %v1386_v48 }
  0x67   :  { %923 = vmatpush.bf16.msrb.mxu1 %v1398_v39 }
  0x6b   :  { %924 = vmatpush.bf16.msrb.mxu1 %v1390_v51 }
  0x95   :  { %v1903_v2 = vpop.f32.mrf.mxu0 }
  0x96   :  { %v1905_v7 = vpop.f32.mrf.mxu1 }
  0x9d   :  { %v152_v28 = vpop.f32.mrf.mxu0 }
  0x9e   :  { %v166_v33 = vpop.f32.mrf.mxu1 }
  0xb2   :  { %v376_v53 = vpop.f32.mrf.mxu0  ;;  %v348_v56 = vpop.f32.mrf.mxu2 }
  0xb3   :  { %v377_v54 = vadd.f32 %v376_v53, %v1905_v7  ;;  %v390_v55 = vpop.f32.mrf.mxu1  ;;  %v349_v58 = vadd.f32 %v348_v56, %v1903_v2  ;;  %v362_v59 = vpop.f32.mrf.mxu3  ;;  %v1511_v53 = vld [vmem:[#allocation5 + $0x34] sm:$0xf0]  ;;  %v1331_v56 = vld [vmem:[#allocation5 + $0x38] sm:$0xf0] }
  0xb5   :  { %v391_v60 = vadd.f32 %v390_v55, %v377_v54  ;;  %v363_v62 = vadd.f32 %v362_v59, %v349_v58  ;;  %v1510_v54 = vld [vmem:[#allocation5 + $0x34] sm:$0xf]  ;;  %v1330_v55 = vor.u32 %v1511_v53, %v1329_v52  ;;  %v1377_v58 = vld [vmem:[#allocation5 + $0x90] sm:$0xf]  ;;  %v1523_v59 = vld [vmem:[#allocation5 + $0x94] sm:$0xf0] }
  0xb6   :  { %v1334_v57 = vor.u32 %v1510_v54, %v1331_v56  ;;  %v711_v53 = vld [vmem:[%s1935_s8] sm:$0x3] }
  0xb7   :  { %v402_v1 = vadd.f32 %v398_v61, %v391_v60  ;;  %v401_v5 = vadd.f32 %v397_v63, %v363_v62  ;;  %v1522_v60 = vld [vmem:[#allocation5 + $0x94] sm:$0xf]  ;;  %v1379_v62 = vld [vmem:[#allocation5 + $0x98] sm:$0xf0]  ;;  %v714_v54 = vperm.slane %v711_v53, 1 }
  0xb9   :  { %v406_v11 = vmul.f32 0.2, %v402_v1  ;;  %v405_v13 = vmul.f32 0.2, %v401_v5 }
  0xba   :  { %v378_v0 = vpop.f32.mrf.mxu0  ;;  %v350_v4 = vpop.f32.mrf.mxu2 }
  0xbb   :  { %v379_v3 = vadd.f32 %v378_v0, %v166_v33  ;;  %v392_v6 = vpop.f32.mrf.mxu1  ;;  %v351_v7 = vadd.f32 %v350_v4, %v152_v28  ;;  %v364_v9 = vpop.f32.mrf.mxu3  ;;  %v410_v16 = vmax.f32 %v402_v1, %v406_v11  ;;  %v409_v18 = vmax.f32 %v401_v5, %v405_v13  ;;  %v1345_v28 = vld [vmem:[#allocation5 + $0x50] sm:$0xf]  ;;  %v1321_v0 = vld [vmem:[#allocation5 + $0x20] sm:$0xf]  ;;  %v1509_v1 = vld [vmem:[#allocation5 + $0x24] sm:$0xf0] }
  0xbc   :  { %v1346_v30 = vor.u32 %v1515_v29, %v1345_v28  ;;  %v1350_v33 = vor.u32 %v1514_v31, %v1347_v32  ;;  %v1322_v4 = vor.u32 %v1509_v1, %v1321_v0  ;;  %v1323_v5 = vld [vmem:[#allocation5 + $0x28] sm:$0xf0]  ;;  %v1313_v13 = vld [vmem:[#allocation5 + $0x10] sm:$0xf]  ;;  %v449_v29 = vperm.slane %v447_v24, 0 }
  0xbd   :  { %v393_v8 = vadd.f32 %v392_v6, %v379_v3  ;;  %v365_v10 = vadd.f32 %v364_v9, %v351_v7  ;;  %v1508_v3 = vld [vmem:[#allocation5 + $0x24] sm:$0xf]  ;;  %v1369_v7 = vld [vmem:[#allocation5 + $0x80] sm:$0xf]  ;;  %v1371_v11 = vld [vmem:[#allocation5 + $0x88] sm:$0xf0] }
  0xbe   :  { %879 = vmatpush.bf16.msra.mxu2 %v1346_v30  ;;  %907 = vmatpush.bf16.msrb.mxu0 %v1350_v33  ;;  %v1326_v6 = vor.u32 %v1508_v3, %v1323_v5  ;;  %v1520_v9 = vld [vmem:[#allocation5 + $0x84] sm:$0xf]  ;;  %v941_v0 = vld [vmem:[%s1936_s9] sm:$0x3] }
  0xbf   :  { %v404_v12 = vadd.f32 %v398_v61, %v393_v8  ;;  %v403_v2 = vadd.f32 %v397_v63, %v365_v10  ;;  %v1378_v61 = vor.u32 %v1523_v59, %v1377_v58  ;;  %v1382_v63 = vor.u32 %v1522_v60, %v1379_v62  ;;  %v1521_v8 = vld [vmem:[#allocation5 + $0x84] sm:$0xf0] }
  0xc0   :  { %v1370_v10 = vor.u32 %v1521_v8, %v1369_v7  ;;  %v713_v59 = vperm.slane %v711_v53, 0 }
  0xc1   :  { %v408_v14 = vmul.f32 0.2, %v404_v12  ;;  %v407_v15 = vmul.f32 0.2, %v403_v2  ;;  %897 = vmatpush.bf16.msra.mxu3 %v1378_v61  ;;  %925 = vmatpush.bf16.msrb.mxu1 %v1382_v63 }
  0xc2   :  { %880 = vmatpush.bf16.msra.mxu2 %v1338_v43  ;;  %908 = vmatpush.bf16.msrb.mxu0 %v1342_v45 }
  0xc3   :  { %v412_v17 = vmax.f32 %v404_v12, %v408_v14  ;;  %v411_v19 = vmax.f32 %v403_v2, %v407_v15  ;;  %v1374_v12 = vor.u32 %v1520_v9, %v1371_v11  ;;  %v1507_v2 = vld [vmem:[#allocation5 + $0x14] sm:$0xf0]  ;;  %v1506_v14 = vld [vmem:[#allocation5 + $0x14] sm:$0xf] }
  0xc4   :  { %v1314_v15 = vor.u32 %v1507_v2, %v1313_v13 }
  0xc5   :  { %v414_v20 = vpack.c.bf16 %v412_v17, %v410_v16  ;;  %v413_v21 = vpack.c.bf16 %v411_v19, %v409_v18  ;;  %898 = vmatpush.bf16.msra.mxu3 %v1370_v10  ;;  %v1315_v16 = vld [vmem:[#allocation5 + $0x18] sm:$0xf0]  ;;  %926 = vmatpush.bf16.msrb.mxu1 %v1374_v12  ;;  %v1305_v18 = vld [vmem:[#allocation5] sm:$0xf]  ;;  %v1505_v19 = vld [vmem:[#allocation5 + $0x4] sm:$0xf0] }
  0xc6   :  { %881 = vmatpush.bf16.msra.mxu2 %v1330_v55  ;;  %909 = vmatpush.bf16.msrb.mxu0 %v1334_v57  ;;  %v1318_v17 = vor.u32 %v1506_v14, %v1315_v16  ;;  %v943_v10 = vperm.slane %v941_v0, 0 }
  0xc7   :  { %635 = vmatmul.bf16.vlgmr.msrb.gmra.mxu3 %v414_v20  ;;  %663 = vmatmul.bf16.vlgmr.msra.gmra.mxu1 %v414_v20  ;;  %v1504_v20 = vld [vmem:[#allocation5 + $0x4] sm:$0xf] }
  0xc8   :  { %621 = vmatmul.bf16.vlgmr.msrb.gmra.mxu2 %v413_v21  ;;  %649 = vmatmul.bf16.vlgmr.msra.gmra.mxu0 %v413_v21  ;;  %v1306_v21 = vor.u32 %v1505_v19, %v1305_v18  ;;  %v1310_v23 = vor.u32 %v1504_v20, %v1307_v22 }
  0xca   :  { %882 = vmatpush.bf16.msra.mxu2 %v1322_v4  ;;  %910 = vmatpush.bf16.msrb.mxu0 %v1326_v6  ;;  %v944_v6 = vperm.slane %v941_v0, 1 }
  0xce   :  { %883 = vmatpush.bf16.msra.mxu2 %v1314_v15  ;;  %911 = vmatpush.bf16.msrb.mxu0 %v1318_v17 }
  0xd2   :  { %884 = vmatpush.bf16.msra.mxu2 %v1306_v21  ;;  %912 = vmatpush.bf16.msrb.mxu0 %v1310_v23 }
 0x144   :  { %v664_v26 = vpop.f32.mrf.mxu1 }
 0x145   :  { %v650_v27 = vpop.f32.mrf.mxu0 }
 0x146   :  { %v651_v28 = vadd.f32 %v650_v27, %v450_v25 }
 0x148   :  { %v665_v32 = vadd.f32 %v664_v26, %v651_v28 }
 0x14a   :  { %v636_v30 = vpop.f32.mrf.mxu3  ;;  %v670_v37 = vmul.f32 0.2, %v665_v32 }
 0x14b   :  { %v622_v31 = vpop.f32.mrf.mxu2 }
 0x14c   :  { %v623_v34 = vadd.f32 %v622_v31, %v449_v29  ;;  %v666_v36 = vpop.f32.mrf.mxu1  ;;  %v674_v42 = vmax.f32 %v665_v32, %v670_v37 }
 0x14d   :  { %v652_v33 = vpop.f32.mrf.mxu0 }
 0x14e   :  { %v653_v35 = vadd.f32 %v652_v33, %v450_v25  ;;  %v637_v39 = vadd.f32 %v636_v30, %v623_v34  ;;  %v958_v25 = vstv %s1937_s10 }
 0x150   :  { %v667_v38 = vadd.f32 %v666_v36, %v653_v35  ;;  %v669_v46 = vmul.f32 0.2, %v637_v39 }
 0x152   :  { %v672_v40 = vmul.f32 0.2, %v667_v38  ;;  %v638_v45 = vpop.f32.mrf.mxu3  ;;  %v673_v50 = vmax.f32 %v637_v39, %v669_v46 }
 0x153   :  { %v624_v41 = vpop.f32.mrf.mxu2 }
 0x154   :  { %v676_v43 = vmax.f32 %v667_v38, %v672_v40  ;;  %v625_v44 = vadd.f32 %v624_v41, %v449_v29  ;;  %v1001_v41 = vlaneseq }
 0x156   :  { %v678_v47 = vpack.c.bf16 %v676_v43, %v674_v42  ;;  %v639_v48 = vadd.f32 %v638_v45, %v625_v44 }
 0x158   :  { %v671_v49 = vmul.f32 0.2, %v639_v48  ;;  %899 = vmatmul.bf16.vlgmr.msra.gmra.mxu3 %v678_v47  ;;  %927 = vmatmul.bf16.vlgmr.msrb.gmra.mxu1 %v678_v47  ;;  %v1002_v47 = vand.u32 127, %v1001_v41 }
 0x15a   :  { %v675_v51 = vmax.f32 %v639_v48, %v671_v49  ;;  %v1004_v53 = vadd.s32 4294967288, %v1002_v47 }
 0x15c   :  { %v677_v52 = vpack.c.bf16 %v675_v51, %v673_v50 }
 0x15e   :  { %885 = vmatmul.bf16.vlgmr.msra.gmra.mxu2 %v677_v52  ;;  %913 = vmatmul.bf16.vlgmr.msrb.gmra.mxu0 %v677_v52 }
 0x1d5   :  { %v928_v55 = vpop.f32.mrf.mxu1 }
 0x1db   :  { %v914_v56 = vpop.f32.mrf.mxu0  ;;  %v900_v60 = vpop.f32.mrf.mxu3 }
 0x1dc   :  { %v915_v57 = vadd.f32 %v914_v56, %v714_v54 }
 0x1dd   :  { %v930_v5 = vpop.f32.mrf.mxu1 }
 0x1de   :  { %v929_v58 = vadd.f32 %v928_v55, %v915_v57 }
 0x1e0   :  { %v934_v62 = vmul.f32 0.2, %v929_v58 }
 0x1e1   :  { %v886_v61 = vpop.f32.mrf.mxu2 }
 0x1e2   :  { %v887_v63 = vadd.f32 %v886_v61, %v713_v59  ;;  %v938_v9 = vmax.f32 %v929_v58, %v934_v62 }
 0x1e3   :  { %v916_v1 = vpop.f32.mrf.mxu0  ;;  %v902_v16 = vpop.f32.mrf.mxu3 }
 0x1e4   :  { %v901_v3 = vadd.f32 %v900_v60, %v887_v63  ;;  %v917_v4 = vadd.f32 %v916_v1, %v714_v54  ;;  %v948_v15 = vmul.f32 %v944_v6, %v938_v9 }
 0x1e6   :  { %v933_v7 = vmul.f32 0.2, %v901_v3  ;;  %v931_v8 = vadd.f32 %v930_v5, %v917_v4 }
 0x1e8   :  { %v937_v11 = vmax.f32 %v901_v3, %v933_v7  ;;  %v936_v13 = vmul.f32 0.2, %v931_v8 }
 0x1e9   :  { %v888_v12 = vpop.f32.mrf.mxu2 }
 0x1ea   :  { %v889_v2 = vadd.f32 %v888_v12, %v713_v59  ;;  %v947_v14 = vmul.f32 %v943_v10, %v937_v11  ;;  %v940_v19 = vmax.f32 %v931_v8, %v936_v13 }
 0x1ec   :  { %v903_v17 = vadd.f32 %v902_v16, %v889_v2  ;;  %v951_v18 = vadd.f32 %v948_v15, %v947_v14  ;;  %v950_v23 = vmul.f32 %v944_v6, %v940_v19 }
 0x1ee   :  { %v935_v20 = vmul.f32 0.2, %v903_v17  ;;  %952 = vadd.xlane.f32.xlu0 %v951_v18 }
 0x1f0   :  { %v939_v21 = vmax.f32 %v903_v17, %v935_v20 }
 0x1f2   :  { %v949_v22 = vmul.f32 %v943_v10, %v939_v21 }
 0x1f4   :  { %v954_v24 = vadd.f32 %v950_v23, %v949_v22 }
 0x1f6   :  { %955 = vadd.xlane.f32.xlu0 %v954_v24 }
 0x261   :  { %v953_v26 = vpop.xlane.xlu0 %952 }
 0x262   :  { %v959_v27 = vadd.f32 %v958_v25, %v953_v26 }
 0x264   :  { %v1431_v28 = vmul.f32 -1.442695, %v959_v27 }
 0x266   :  { %1540 = vpow2.f32 %v1431_v28 }
 0x269   :  { %v956_v29 = vpop.xlane.xlu0 %955 }
 0x26a   :  { %v960_v30 = vadd.f32 %v958_v25, %v956_v29 }
 0x26c   :  { %v1541_v31 = vpop.eup %1540  ;;  %v1432_v32 = vmul.f32 -1.442695, %v960_v30 }
 0x26d   :  { %v967_v33 = vadd.f32 1.0, %v1541_v31 }
 0x26e   :  { %1542 = vpow2.f32 %v1432_v32 }
 0x26f   :  { %1544 = vrcp.f32 %v967_v33  ;;  %v980_v44 = vand.u32 2147483648, %v967_v33  ;;  %vm974_vm2 = vweird.f32 %v967_v33  ;;  %v978_v45 = vand.u32 2147483647, %v967_v33 }
 0x271   :  { %v981_v52 = vor.u32 1.1754944e-38, %v980_v44  ;;  %vm979_vm5 = vcmp.eq.f32.partialorder %v978_v45, 8.507059e+37 }
 0x274   :  { %v1543_v34 = vpop.eup %1542 }
 0x275   :  { %v1545_v35 = vpop.eup %1544  ;;  %v968_v36 = vadd.f32 1.0, %v1543_v34 }
 0x276   :  { %v970_v37 = vmul.f32 %v1545_v35, %v967_v33  ;;  %vm975_vm1 = vweird.f32 %v1545_v35 }
 0x277   :  { %1546 = vrcp.f32 %v968_v36  ;;  %vm976_vm3 = vmor %vm974_vm2, %vm975_vm1  ;;  %v995_v48 = vand.u32 2147483648, %v968_v36  ;;  %v993_v51 = vand.u32 2147483647, %v968_v36  ;;  %vm989_vm6 = vweird.f32 %v968_v36 }
 0x278   :  { %v971_v38 = vsub.f32 1.0, %v970_v37 }
 0x279   :  { %v996_v56 = vor.u32 1.1754944e-38, %v995_v48  ;;  %vm994_vm8 = vcmp.eq.f32.partialorder %v993_v51, 8.507059e+37 }
 0x27a   :  { %v972_v39 = vmul.f32 %v1545_v35, %v971_v38 }
 0x27c   :  { %v973_v42 = vadd.f32 %v1545_v35, %v972_v39 }
 0x27d   :  { %v1547_v40 = vpop.eup %1546 }
 0x27e   :  { %v985_v43 = vmul.f32 %v1547_v40, %v968_v36  ;;  %v977_v49 = vsel %vm976_vm3, %v1545_v35, %v973_v42  ;;  %vm990_vm4 = vweird.f32 %v1547_v40 }
 0x27f   :  { %v982_v55 = vsel %vm979_vm5, %v981_v52, %v977_v49  ;;  %vm991_vm7 = vmor %vm989_vm6, %vm990_vm4 }
 0x280   :  { %v986_v46 = vsub.f32 1.0, %v985_v43  ;;  %v1003_v59 = vperm.slane %v982_v55, %v1002_v47 }
 0x282   :  { %v987_v50 = vmul.f32 %v1547_v40, %v986_v46 }
 0x284   :  { %v988_v54 = vadd.f32 %v1547_v40, %v987_v50 }
 0x286   :  { %v992_v57 = vsel %vm991_vm7, %v1547_v40, %v988_v54 }
 0x287   :  { %v997_v58 = vsel %vm994_vm8, %v996_v56, %v992_v57 }
 0x288   :  { %v1005_v60 = vperm.slane %v997_v58, %v1004_v53 }
 0x28a   :  { %v1007_v61 = vsel %vm1006_vm9, %v1005_v60, %v1003_v59 }
 0x28b   :  { %1010 = vst.msk [vmem:[%s1938_s11] sm:$0x1] %vm1009_vm10, %v1007_v61 }
 0x28c   :  { %1015 = vsyncpa [#allocation4], 1 }
 0x28d   :  { %1016 = vsyncpa [#allocation6], 1 }

</bundles_post_ra>
